<compile_context>
chip_gen: v7x
topology: tpu7x:2x2x1
jax: 0.10.0
libtpu: 0.0.40
codegen_flags: <defaults>
</compile_context>

<pallas_src>
import functools

import jax
import jax.numpy as jnp
from jax.experimental import pallas as pl
from jax.experimental.pallas import tpu as pltpu

_SQRT_HALF = 0.7071067811865476  # 1/sqrt(2)
_LN_EPS = 1e-5


def _layernorm(x, gamma, beta):
    mu = jnp.mean(x, axis=-1, keepdims=True)
    var = jnp.mean((x - mu) ** 2, axis=-1, keepdims=True)
    return (x - mu) * jax.lax.rsqrt(var + _LN_EPS) * gamma + beta


def _gelu_exact(x):
    # torch.nn.GELU default (erf-based, exact).  Kept exact to match torch
    # numerics (tanh-approx would use the EUP but changes results).
    return 0.5 * x * (1.0 + jax.lax.erf(x * _SQRT_HALF))


# ---------------------------------------------------------------------------
# Fused per-layer kernel:
#   (optional pos add) + PreNorm + MHA + residual + PreNorm + FF + residual
# ---------------------------------------------------------------------------
def layer_kernel(x_ref, pos_ref, g1_ref, b1_ref, wqkv_ref, wo_ref, bo_ref,
                 g2_ref, b2_ref, w1_ref, bb1_ref, w2_ref, bb2_ref,
                 o_ref, attn_acc, *, heads, scale, add_pos):
    BT, N, D = x_ref.shape
    dh = D // heads

    x = x_ref[...].astype(jnp.float32)                      # (BT, N, D)
    if add_pos:
        # pos_full is zero on the first num_keypoints rows, so this implements
        # x[:, num_keypoints:] += pos fused into the layer kernel.
        x = x + pos_ref[...].astype(jnp.float32)            # (1,N,D) bcast over BT
    xr = x.reshape(BT * N, D)                               # row slab for matmuls

    # ---- PreNorm + multi-head self-attention + residual ----
    xn = _layernorm(xr, g1_ref[...].astype(jnp.float32),
                    b1_ref[...].astype(jnp.float32))
    qkv = jnp.dot(xn.astype(wqkv_ref.dtype), wqkv_ref[...],
                  preferred_element_type=jnp.float32)       # (BT*N, 3D) f32
    q = qkv[:, 0 * D:1 * D] * scale                         # fold scale into q
    k = qkv[:, 1 * D:2 * D]
    v = qkv[:, 2 * D:3 * D]

    def to_heads(t):
        # (BT*N, D) -> (BT*heads, N, dh): leading batch dim for batched einsum.
        t = t.reshape(BT, N, D)
        return jnp.stack([t[b, :, h * dh:(h + 1) * dh]
                          for b in range(BT) for h in range(heads)], axis=0)

    q3, k3, v3 = to_heads(q), to_heads(k), to_heads(v)

    dots = jnp.einsum('hnd,hmd->hnm', q3, k3,
                      preferred_element_type=jnp.float32)   # (BT*heads, N, N)
    dots = dots - jnp.max(dots, axis=-1, keepdims=True)
    e = jnp.exp(dots)
    denom = jnp.sum(e, axis=-1, keepdims=True)
    attn = e * pl.reciprocal(denom, approx=True)            # EUP, not VALU divide
    o3 = jnp.einsum('hnm,hmd->hnd', attn, v3,
                    preferred_element_type=jnp.float32)     # (BT*heads, N, dh)

    # Scatter head outputs into a VMEM scratch slab (== 'b h n d -> b n (h d)')
    for b in range(BT):
        for h in range(heads):
            attn_acc[b, :, h * dh:(h + 1) * dh] = o3[b * heads + h]
    heads_cat = attn_acc[...].reshape(BT * N, D)

    proj = jnp.dot(heads_cat.astype(wo_ref.dtype), wo_ref[...],
                   preferred_element_type=jnp.float32) + bo_ref[...].astype(jnp.float32)
    x1 = xr + proj                                          # x = attn(norm(x)) + x

    # ---- Residual(PreNorm(FeedForward)) ----
    xn2 = _layernorm(x1, g2_ref[...].astype(jnp.float32),
                     b2_ref[...].astype(jnp.float32))
    h1 = jnp.dot(xn2.astype(w1_ref.dtype), w1_ref[...],
                 preferred_element_type=jnp.float32) + bb1_ref[...].astype(jnp.float32)
    h1 = _gelu_exact(h1)
    y = jnp.dot(h1.astype(w2_ref.dtype), w2_ref[...],
                preferred_element_type=jnp.float32) + bb2_ref[...].astype(jnp.float32)
    out = x1 + y                                            # x = ff(norm(x)) + x

    o_ref[...] = out.reshape(BT, N, D).astype(o_ref.dtype)


def _pick_batch_tile(B, N, max_rows=512):
    # Block several batch elements per grid step so each step moves a decent
    # row slab (amortizes ~0.35us/step), but keep >= 2 grid steps where
    # possible so both v7x TensorCores get work.
    best = 1
    for bt in range(1, B + 1):
        if B % bt != 0:
            continue
        if bt * N > max_rows:
            continue
        if B >= 2 and (B // bt) < 2:
            continue
        best = bt
    return best


def transformer_layer(x, pos_full, p, *, heads, scale, add_pos, bt):
    B, N, D = x.shape
    H = p["w1"].shape[1]
    x_isz = jnp.dtype(x.dtype).itemsize
    w_isz = jnp.dtype(p["wqkv"].dtype).itemsize

    flops = 2 * B * N * D * (4 * D + 2 * N + 2 * H)
    transcendentals = B * heads * N * N + B * N * H + 3 * B * N
    bytes_accessed = ((2 * B * N * D + N * D) * x_isz
                      + (4 * D * D + 2 * D * H + 4 * D + H) * w_isz)
    cost = pl.CostEstimate(flops=flops, transcendentals=transcendentals,
                           bytes_accessed=bytes_accessed)

    kernel = functools.partial(layer_kernel, heads=heads, scale=scale,
                               add_pos=add_pos)
    return pl.pallas_call(
        kernel,
        out_shape=jax.ShapeDtypeStruct((B, N, D), x.dtype),
        grid_spec=pltpu.PrefetchScalarGridSpec(
            num_scalar_prefetch=0,
            grid=(B // bt,),
            in_specs=[
                pl.BlockSpec((bt, N, D), lambda i: (i, 0, 0)),   # x
                pl.BlockSpec((1, N, D), lambda i: (0, 0, 0)),    # pos (padded)
                pl.BlockSpec((1, D), lambda i: (0, 0)),          # ln1 gamma
                pl.BlockSpec((1, D), lambda i: (0, 0)),          # ln1 beta
                pl.BlockSpec((D, 3 * D), lambda i: (0, 0)),      # wqkv
                pl.BlockSpec((D, D), lambda i: (0, 0)),          # wout
                pl.BlockSpec((1, D), lambda i: (0, 0)),          # bout
                pl.BlockSpec((1, D), lambda i: (0, 0)),          # ln2 gamma
                pl.BlockSpec((1, D), lambda i: (0, 0)),          # ln2 beta
                pl.BlockSpec((D, H), lambda i: (0, 0)),          # w1
                pl.BlockSpec((1, H), lambda i: (0, 0)),          # b1
                pl.BlockSpec((H, D), lambda i: (0, 0)),          # w2
                pl.BlockSpec((1, D), lambda i: (0, 0)),          # b2
            ],
            out_specs=pl.BlockSpec((bt, N, D), lambda i: (i, 0, 0)),
            scratch_shapes=[pltpu.VMEM((bt, N, D), jnp.float32)],
        ),
        compiler_params=pltpu.CompilerParams(dimension_semantics=("parallel",)),
        cost_estimate=cost,
    )(x, pos_full, p["ln1_g"], p["ln1_b"], p["wqkv"], p["wout"], p["bout"],
      p["ln2_g"], p["ln2_b"], p["w1"], p["b1"], p["w2"], p["b2"])


# ---------------------------------------------------------------------------
# Transformer wrapper (parameter setup + layer loop = glue)
# ---------------------------------------------------------------------------
def init_params(key, depth, dim, mlp_dim):
    params = []
    for _ in range(depth):
        keys = jax.random.split(key, 9)
        key = keys[0]
        s = 0.05
        layer = dict(
            ln1_g=1.0 + s * jax.random.normal(keys[1], (1, dim), jnp.float32),
            ln1_b=s * jax.random.normal(keys[2], (1, dim), jnp.float32),
            wqkv=s * jax.random.normal(keys[3], (dim, 3 * dim), jnp.float32),
            wout=s * jax.random.normal(keys[4], (dim, dim), jnp.float32),
            bout=s * jax.random.normal(keys[5], (1, dim), jnp.float32),
            ln2_g=1.0 + s * jax.random.normal(keys[6], (1, dim), jnp.float32),
            ln2_b=s * jax.random.normal(keys[7], (1, dim), jnp.float32),
            w1=s * jax.random.normal(keys[8], (dim, mlp_dim), jnp.float32),
        )
        keys2 = jax.random.split(key, 4)
        key = keys2[0]
        layer["b1"] = s * jax.random.normal(keys2[1], (1, mlp_dim), jnp.float32)
        layer["w2"] = s * jax.random.normal(keys2[2], (mlp_dim, dim), jnp.float32)
        layer["b2"] = s * jax.random.normal(keys2[3], (1, dim), jnp.float32)
        params.append(layer)
    return params


def transformer_forward(x, pos, params, *, heads, num_keypoints, all_attn=True,
                        scale_with_head=False, batch_tile=None):
    B, N, D = x.shape
    dim_head = D // heads
    scale = (dim_head ** -0.5) if scale_with_head else (D ** -0.5)

    # pos re-injection (x[:, num_keypoints:] += pos for idx>0) is fused into
    # the layer kernel; pad pos to (1, N, D) with zeros on the keypoint rows.
    P = pos.shape[1]
    assert num_keypoints + P == N
    pos_full = jnp.pad(pos[:1].astype(jnp.float32),
                       ((0, 0), (num_keypoints, 0), (0, 0)))

    bt = batch_tile or _pick_batch_tile(B, N)
    assert B % bt == 0

    for idx, p in enumerate(params):
        add_pos = (idx > 0) and all_attn
        # TODO(synk): prune=True token pruning (topk + gather) not implemented.
        x = transformer_layer(x, pos_full, p, heads=heads, scale=scale,
                              add_pos=add_pos, bt=bt)
    return x


# ---------------------------------------------------------------------------
# Plain-JAX reference (for correctness check)
# ---------------------------------------------------------------------------
def _ref_forward(x, pos, params, *, heads, num_keypoints, all_attn=True):
    B, N, D = x.shape
    scale = D ** -0.5
    dh = D // heads
    pos = jnp.broadcast_to(pos, (B,) + pos.shape[1:])
    for idx, p in enumerate(params):
        if idx > 0 and all_attn:
            x = x.at[:, num_keypoints:, :].add(pos)
        xn = _layernorm(x, p["ln1_g"], p["ln1_b"])
        qkv = xn @ p["wqkv"]
        q, k, v = jnp.split(qkv, 3, axis=-1)
        q = q.reshape(B, N, heads, dh).transpose(0, 2, 1, 3)
        k = k.reshape(B, N, heads, dh).transpose(0, 2, 1, 3)
        v = v.reshape(B, N, heads, dh).transpose(0, 2, 1, 3)
        dots = jnp.einsum("bhid,bhjd->bhij", q, k) * scale
        attn = jax.nn.softmax(dots, axis=-1)
        out = jnp.einsum("bhij,bhjd->bhid", attn, v)
        out = out.transpose(0, 2, 1, 3).reshape(B, N, D)
        x = out @ p["wout"] + p["bout"] + x
        xn2 = _layernorm(x, p["ln2_g"], p["ln2_b"])
        h = _gelu_exact(xn2 @ p["w1"] + p["b1"])
        x = h @ p["w2"] + p["b2"] + x
    return x


if __name__ == "__main__":
    # Small, module-consistent shapes
    B, J, P = 2, 4, 8          # batch, num_keypoints, num_patches
    N = J + P                  # total tokens
    dim, heads, mlp_dim, depth = 32, 4, 64, 2

    key = jax.random.PRNGKey(0)
    kx, kp, kparam = jax.random.split(key, 3)
    x = jax.random.normal(kx, (B, N, dim), jnp.float32)
    pos = jax.random.normal(kp, (1, P, dim), jnp.float32)
    params = init_params(kparam, depth, dim, mlp_dim)

    out = transformer_forward(x, pos, params, heads=heads, num_keypoints=J,
                              all_attn=True)
    out = jax.block_until_ready(out)

    ref = _ref_forward(x, pos, params, heads=heads, num_keypoints=J, all_attn=True)
    assert out.shape == (B, N, dim)
    # approx reciprocal in the softmax denominator loosens the tolerance a bit
    assert jnp.allclose(out, ref, atol=2e-3, rtol=2e-3), "mismatch vs reference"
    print("KERNEL_OK")
</pallas_src>

<mosaic_0001>
module attributes {stable_mosaic.version = 11 : i64} {
  func.func @layer_kernel(%arg0: i32, %arg1: memref<1x12x32xf32, #tpu.memory_space<vmem>>, %arg2: memref<1x12x32xf32, #tpu.memory_space<vmem>>, %arg3: memref<1x32xf32, #tpu.memory_space<vmem>>, %arg4: memref<1x32xf32, #tpu.memory_space<vmem>>, %arg5: memref<32x96xf32, #tpu.memory_space<vmem>>, %arg6: memref<32x32xf32, #tpu.memory_space<vmem>>, %arg7: memref<1x32xf32, #tpu.memory_space<vmem>>, %arg8: memref<1x32xf32, #tpu.memory_space<vmem>>, %arg9: memref<1x32xf32, #tpu.memory_space<vmem>>, %arg10: memref<32x64xf32, #tpu.memory_space<vmem>>, %arg11: memref<1x64xf32, #tpu.memory_space<vmem>>, %arg12: memref<64x32xf32, #tpu.memory_space<vmem>>, %arg13: memref<1x32xf32, #tpu.memory_space<vmem>>, %arg14: memref<1x12x32xf32, #tpu.memory_space<vmem>>, %arg15: memref<1x12x32xf32, #tpu.memory_space<vmem>>) attributes {dimension_semantics = [#tpu.dimension_semantics<parallel>], iteration_bounds = array<i64: 2>, scalar_prefetch = 0 : i64, scratch_operands = 1 : i64, tpu.core_type = #tpu.core_type<tc>, window_params = [{transform_indices = @transform_0, window_bounds = array<i64: 1, 12, 32>}, {pipeline_mode = #tpu.pipeline_mode<synchronous>, transform_indices = @transform_1, window_bounds = array<i64: 1, 12, 32>}, {pipeline_mode = #tpu.pipeline_mode<synchronous>, transform_indices = @transform_2, window_bounds = array<i64: 1, 32>}, {pipeline_mode = #tpu.pipeline_mode<synchronous>, transform_indices = @transform_3, window_bounds = array<i64: 1, 32>}, {pipeline_mode = #tpu.pipeline_mode<synchronous>, transform_indices = @transform_4, window_bounds = array<i64: 32, 96>}, {pipeline_mode = #tpu.pipeline_mode<synchronous>, transform_indices = @transform_5, window_bounds = array<i64: 32, 32>}, {pipeline_mode = #tpu.pipeline_mode<synchronous>, transform_indices = @transform_6, window_bounds = array<i64: 1, 32>}, {pipeline_mode = #tpu.pipeline_mode<synchronous>, transform_indices = @transform_7, window_bounds = array<i64: 1, 32>}, {pipeline_mode = #tpu.pipeline_mode<synchronous>, transform_indices = @transform_8, window_bounds = array<i64: 1, 32>}, {pipeline_mode = #tpu.pipeline_mode<synchronous>, transform_indices = @transform_9, window_bounds = array<i64: 32, 64>}, {pipeline_mode = #tpu.pipeline_mode<synchronous>, transform_indices = @transform_10, window_bounds = array<i64: 1, 64>}, {pipeline_mode = #tpu.pipeline_mode<synchronous>, transform_indices = @transform_11, window_bounds = array<i64: 64, 32>}, {pipeline_mode = #tpu.pipeline_mode<synchronous>, transform_indices = @transform_12, window_bounds = array<i64: 1, 32>}, {transform_indices = @transform_13, window_bounds = array<i64: 1, 12, 32>}]} {
    %c0 = arith.constant 0 : index
    %c0_0 = arith.constant 0 : index
    %c0_1 = arith.constant 0 : index
    %0 = vector.load %arg1[%c0, %c0_0, %c0_1] : memref<1x12x32xf32, #tpu.memory_space<vmem>>, vector<1x12x32xf32>
    %1 = vector.shape_cast %0 : vector<1x12x32xf32> to vector<12x32xf32>
    %c0_2 = arith.constant 0 : index
    %c0_3 = arith.constant 0 : index
    %2 = vector.load %arg3[%c0_2, %c0_3] : memref<1x32xf32, #tpu.memory_space<vmem>>, vector<1x32xf32>
    %c0_4 = arith.constant 0 : index
    %c0_5 = arith.constant 0 : index
    %3 = vector.load %arg4[%c0_4, %c0_5] : memref<1x32xf32, #tpu.memory_space<vmem>>, vector<1x32xf32>
    %cst = arith.constant dense<0.000000e+00> : vector<12xf32>
    %4 = vector.multi_reduction <add>, %1, %cst [1] : vector<12x32xf32> to vector<12xf32>
    %5 = vector.shape_cast %4 : vector<12xf32> to vector<12x1xf32>
    %cst_6 = arith.constant 3.200000e+01 : f32
    %6 = vector.broadcast %cst_6 : f32 to vector<12x1xf32>
    %7 = arith.divf %5, %6 : vector<12x1xf32>
    %8 = vector.broadcast %7 : vector<12x1xf32> to vector<12x32xf32>
    %9 = arith.subf %1, %8 : vector<12x32xf32>
    %10 = arith.mulf %9, %9 : vector<12x32xf32>
    %cst_7 = arith.constant dense<0.000000e+00> : vector<12xf32>
    %11 = vector.multi_reduction <add>, %10, %cst_7 [1] : vector<12x32xf32> to vector<12xf32>
    %12 = vector.shape_cast %11 : vector<12xf32> to vector<12x1xf32>
    %cst_8 = arith.constant 3.200000e+01 : f32
    %13 = vector.broadcast %cst_8 : f32 to vector<12x1xf32>
    %14 = arith.divf %12, %13 : vector<12x1xf32>
    %15 = vector.broadcast %7 : vector<12x1xf32> to vector<12x32xf32>
    %16 = arith.subf %1, %15 : vector<12x32xf32>
    %cst_9 = arith.constant 9.99999974E-6 : f32
    %17 = vector.broadcast %cst_9 : f32 to vector<12x1xf32>
    %18 = arith.addf %14, %17 : vector<12x1xf32>
    %19 = math.rsqrt %18 : vector<12x1xf32>
    %20 = vector.broadcast %19 : vector<12x1xf32> to vector<12x32xf32>
    %21 = arith.mulf %16, %20 : vector<12x32xf32>
    %22 = vector.broadcast %2 : vector<1x32xf32> to vector<12x32xf32>
    %23 = arith.mulf %21, %22 : vector<12x32xf32>
    %24 = vector.broadcast %3 : vector<1x32xf32> to vector<12x32xf32>
    %25 = arith.addf %23, %24 : vector<12x32xf32>
    %c0_10 = arith.constant 0 : index
    %c0_11 = arith.constant 0 : index
    %26 = vector.load %arg5[%c0_10, %c0_11] : memref<32x96xf32, #tpu.memory_space<vmem>>, vector<32x96xf32>
    %cst_12 = arith.constant dense<0.000000e+00> : vector<12x96xf32>
    %27 = tpu.matmul %25, %26, %cst_12 {dimension_numbers = #tpu.dot_dimension_numbers<[1], [0], [0], [1], [0, 0, 1, 1], [], []>} : vector<12x32xf32>, vector<32x96xf32>, vector<12x96xf32> -> vector<12x96xf32>
    %28 = vector.extract_strided_slice %27 {offsets = [0, 0], sizes = [12, 32], strides = [1, 1]} : vector<12x96xf32> to vector<12x32xf32>
    %cst_13 = arith.constant 0.176776692 : f32
    %29 = vector.broadcast %cst_13 : f32 to vector<12x32xf32>
    %30 = arith.mulf %28, %29 : vector<12x32xf32>
    %31 = vector.extract_strided_slice %27 {offsets = [0, 32], sizes = [12, 32], strides = [1, 1]} : vector<12x96xf32> to vector<12x32xf32>
    %32 = vector.extract_strided_slice %27 {offsets = [0, 64], sizes = [12, 32], strides = [1, 1]} : vector<12x96xf32> to vector<12x32xf32>
    %33 = vector.shape_cast %30 : vector<12x32xf32> to vector<1x12x32xf32>
    %34 = vector.extract_strided_slice %33 {offsets = [0, 0, 0], sizes = [1, 12, 8], strides = [1, 1, 1]} : vector<1x12x32xf32> to vector<1x12x8xf32>
    %35 = vector.shape_cast %34 : vector<1x12x8xf32> to vector<12x8xf32>
    %36 = vector.extract_strided_slice %33 {offsets = [0, 0, 8], sizes = [1, 12, 8], strides = [1, 1, 1]} : vector<1x12x32xf32> to vector<1x12x8xf32>
    %37 = vector.shape_cast %36 : vector<1x12x8xf32> to vector<12x8xf32>
    %38 = vector.extract_strided_slice %33 {offsets = [0, 0, 16], sizes = [1, 12, 8], strides = [1, 1, 1]} : vector<1x12x32xf32> to vector<1x12x8xf32>
    %39 = vector.shape_cast %38 : vector<1x12x8xf32> to vector<12x8xf32>
    %40 = vector.extract_strided_slice %33 {offsets = [0, 0, 24], sizes = [1, 12, 8], strides = [1, 1, 1]} : vector<1x12x32xf32> to vector<1x12x8xf32>
    %41 = vector.shape_cast %40 : vector<1x12x8xf32> to vector<12x8xf32>
    %42 = vector.shape_cast %35 : vector<12x8xf32> to vector<1x12x8xf32>
    %43 = vector.shape_cast %37 : vector<12x8xf32> to vector<1x12x8xf32>
    %44 = vector.shape_cast %39 : vector<12x8xf32> to vector<1x12x8xf32>
    %45 = vector.shape_cast %41 : vector<12x8xf32> to vector<1x12x8xf32>
    %46 = tpu.concatenate %42, %43, %44, %45 in 0 : vector<1x12x8xf32>, vector<1x12x8xf32>, vector<1x12x8xf32>, vector<1x12x8xf32> -> vector<4x12x8xf32>
    %47 = vector.shape_cast %31 : vector<12x32xf32> to vector<1x12x32xf32>
    %48 = vector.extract_strided_slice %47 {offsets = [0, 0, 0], sizes = [1, 12, 8], strides = [1, 1, 1]} : vector<1x12x32xf32> to vector<1x12x8xf32>
    %49 = vector.shape_cast %48 : vector<1x12x8xf32> to vector<12x8xf32>
    %50 = vector.extract_strided_slice %47 {offsets = [0, 0, 8], sizes = [1, 12, 8], strides = [1, 1, 1]} : vector<1x12x32xf32> to vector<1x12x8xf32>
    %51 = vector.shape_cast %50 : vector<1x12x8xf32> to vector<12x8xf32>
    %52 = vector.extract_strided_slice %47 {offsets = [0, 0, 16], sizes = [1, 12, 8], strides = [1, 1, 1]} : vector<1x12x32xf32> to vector<1x12x8xf32>
    %53 = vector.shape_cast %52 : vector<1x12x8xf32> to vector<12x8xf32>
    %54 = vector.extract_strided_slice %47 {offsets = [0, 0, 24], sizes = [1, 12, 8], strides = [1, 1, 1]} : vector<1x12x32xf32> to vector<1x12x8xf32>
    %55 = vector.shape_cast %54 : vector<1x12x8xf32> to vector<12x8xf32>
    %56 = vector.shape_cast %49 : vector<12x8xf32> to vector<1x12x8xf32>
    %57 = vector.shape_cast %51 : vector<12x8xf32> to vector<1x12x8xf32>
    %58 = vector.shape_cast %53 : vector<12x8xf32> to vector<1x12x8xf32>
    %59 = vector.shape_cast %55 : vector<12x8xf32> to vector<1x12x8xf32>
    %60 = tpu.concatenate %56, %57, %58, %59 in 0 : vector<1x12x8xf32>, vector<1x12x8xf32>, vector<1x12x8xf32>, vector<1x12x8xf32> -> vector<4x12x8xf32>
    %61 = vector.shape_cast %32 : vector<12x32xf32> to vector<1x12x32xf32>
    %62 = vector.extract_strided_slice %61 {offsets = [0, 0, 0], sizes = [1, 12, 8], strides = [1, 1, 1]} : vector<1x12x32xf32> to vector<1x12x8xf32>
    %63 = vector.shape_cast %62 : vector<1x12x8xf32> to vector<12x8xf32>
    %64 = vector.extract_strided_slice %61 {offsets = [0, 0, 8], sizes = [1, 12, 8], strides = [1, 1, 1]} : vector<1x12x32xf32> to vector<1x12x8xf32>
    %65 = vector.shape_cast %64 : vector<1x12x8xf32> to vector<12x8xf32>
    %66 = vector.extract_strided_slice %61 {offsets = [0, 0, 16], sizes = [1, 12, 8], strides = [1, 1, 1]} : vector<1x12x32xf32> to vector<1x12x8xf32>
    %67 = vector.shape_cast %66 : vector<1x12x8xf32> to vector<12x8xf32>
    %68 = vector.extract_strided_slice %61 {offsets = [0, 0, 24], sizes = [1, 12, 8], strides = [1, 1, 1]} : vector<1x12x32xf32> to vector<1x12x8xf32>
    %69 = vector.shape_cast %68 : vector<1x12x8xf32> to vector<12x8xf32>
    %70 = vector.shape_cast %63 : vector<12x8xf32> to vector<1x12x8xf32>
    %71 = vector.shape_cast %65 : vector<12x8xf32> to vector<1x12x8xf32>
    %72 = vector.shape_cast %67 : vector<12x8xf32> to vector<1x12x8xf32>
    %73 = vector.shape_cast %69 : vector<12x8xf32> to vector<1x12x8xf32>
    %74 = tpu.concatenate %70, %71, %72, %73 in 0 : vector<1x12x8xf32>, vector<1x12x8xf32>, vector<1x12x8xf32>, vector<1x12x8xf32> -> vector<4x12x8xf32>
    "tpu.trace_start"() <{level = 10 : i32, message = "hnd,hmd->hnm"}> : () -> ()
    %cst_14 = arith.constant dense<0.000000e+00> : vector<4x12x12xf32>
    %75 = tpu.matmul %46, %60, %cst_14 {dimension_numbers = #tpu.dot_dimension_numbers<[2], [2], [1], [1], [0, 0, 0, 1, 1, 1], [0], [0]>} : vector<4x12x8xf32>, vector<4x12x8xf32>, vector<4x12x12xf32> -> vector<4x12x12xf32>
    "tpu.trace_stop"() : () -> ()
    %cst_15 = arith.constant dense<0xFF800000> : vector<4x12xf32>
    %76 = vector.multi_reduction <maximumf>, %75, %cst_15 [2] : vector<4x12x12xf32> to vector<4x12xf32>
    %77 = vector.shape_cast %76 : vector<4x12xf32> to vector<4x12x1xf32>
    %78 = vector.broadcast %77 : vector<4x12x1xf32> to vector<4x12x12xf32>
    %79 = arith.subf %75, %78 : vector<4x12x12xf32>
    %80 = math.exp %79 : vector<4x12x12xf32>
    %cst_16 = arith.constant dense<0.000000e+00> : vector<4x12xf32>
    %81 = vector.multi_reduction <add>, %80, %cst_16 [2] : vector<4x12x12xf32> to vector<4x12xf32>
    %82 = vector.shape_cast %81 : vector<4x12xf32> to vector<4x12x1xf32>
    %83 = tpu.reciprocal %82 {approx = true} : vector<4x12x1xf32> -> vector<4x12x1xf32>
    %84 = vector.broadcast %83 : vector<4x12x1xf32> to vector<4x12x12xf32>
    %85 = arith.mulf %80, %84 : vector<4x12x12xf32>
    "tpu.trace_start"() <{level = 10 : i32, message = "hnm,hmd->hnd"}> : () -> ()
    %cst_17 = arith.constant dense<0.000000e+00> : vector<4x12x8xf32>
    %86 = tpu.matmul %85, %74, %cst_17 {dimension_numbers = #tpu.dot_dimension_numbers<[2], [1], [1], [2], [0, 0, 0, 1, 1, 2], [0], [0]>} : vector<4x12x12xf32>, vector<4x12x8xf32>, vector<4x12x8xf32> -> vector<4x12x8xf32>
    "tpu.trace_stop"() : () -> ()
    %87 = vector.extract_strided_slice %86 {offsets = [0, 0, 0], sizes = [1, 12, 8], strides = [1, 1, 1]} : vector<4x12x8xf32> to vector<1x12x8xf32>
    %88 = vector.shape_cast %87 : vector<1x12x8xf32> to vector<12x8xf32>
    %c0_18 = arith.constant 0 : index
    %c0_19 = arith.constant 0 : index
    %c0_20 = arith.constant 0 : index
    %89 = vector.load %arg15[%c0_18, %c0_19, %c0_20] : memref<1x12x32xf32, #tpu.memory_space<vmem>>, vector<1x12x8xf32>
    %90 = vector.shape_cast %89 : vector<1x12x8xf32> to vector<12x8xf32>
    %91 = vector.shape_cast %88 : vector<12x8xf32> to vector<1x12x8xf32>
    tpu.vector_store %arg15[%c0_18, %c0_19, %c0_20], %91 {strides = array<i32>} : memref<1x12x32xf32, #tpu.memory_space<vmem>>, vector<1x12x8xf32>,
    %92 = vector.extract_strided_slice %86 {offsets = [1, 0, 0], sizes = [1, 12, 8], strides = [1, 1, 1]} : vector<4x12x8xf32> to vector<1x12x8xf32>
    %93 = vector.shape_cast %92 : vector<1x12x8xf32> to vector<12x8xf32>
    %c0_21 = arith.constant 0 : index
    %c0_22 = arith.constant 0 : index
    %c8 = arith.constant 8 : index
    %94 = vector.load %arg15[%c0_21, %c0_22, %c8] : memref<1x12x32xf32, #tpu.memory_space<vmem>>, vector<1x12x8xf32>
    %95 = vector.shape_cast %94 : vector<1x12x8xf32> to vector<12x8xf32>
    %96 = vector.shape_cast %93 : vector<12x8xf32> to vector<1x12x8xf32>
    tpu.vector_store %arg15[%c0_21, %c0_22, %c8], %96 {strides = array<i32>} : memref<1x12x32xf32, #tpu.memory_space<vmem>>, vector<1x12x8xf32>,
    %97 = vector.extract_strided_slice %86 {offsets = [2, 0, 0], sizes = [1, 12, 8], strides = [1, 1, 1]} : vector<4x12x8xf32> to vector<1x12x8xf32>
    %98 = vector.shape_cast %97 : vector<1x12x8xf32> to vector<12x8xf32>
    %c0_23 = arith.constant 0 : index
    %c0_24 = arith.constant 0 : index
    %c16 = arith.constant 16 : index
    %99 = vector.load %arg15[%c0_23, %c0_24, %c16] : memref<1x12x32xf32, #tpu.memory_space<vmem>>, vector<1x12x8xf32>
    %100 = vector.shape_cast %99 : vector<1x12x8xf32> to vector<12x8xf32>
    %101 = vector.shape_cast %98 : vector<12x8xf32> to vector<1x12x8xf32>
    tpu.vector_store %arg15[%c0_23, %c0_24, %c16], %101 {strides = array<i32>} : memref<1x12x32xf32, #tpu.memory_space<vmem>>, vector<1x12x8xf32>,
    %102 = vector.extract_strided_slice %86 {offsets = [3, 0, 0], sizes = [1, 12, 8], strides = [1, 1, 1]} : vector<4x12x8xf32> to vector<1x12x8xf32>
    %103 = vector.shape_cast %102 : vector<1x12x8xf32> to vector<12x8xf32>
    %c0_25 = arith.constant 0 : index
    %c0_26 = arith.constant 0 : index
    %c24 = arith.constant 24 : index
    %104 = vector.load %arg15[%c0_25, %c0_26, %c24] : memref<1x12x32xf32, #tpu.memory_space<vmem>>, vector<1x12x8xf32>
    %105 = vector.shape_cast %104 : vector<1x12x8xf32> to vector<12x8xf32>
    %106 = vector.shape_cast %103 : vector<12x8xf32> to vector<1x12x8xf32>
    tpu.vector_store %arg15[%c0_25, %c0_26, %c24], %106 {strides = array<i32>} : memref<1x12x32xf32, #tpu.memory_space<vmem>>, vector<1x12x8xf32>,
    %c0_27 = arith.constant 0 : index
    %c0_28 = arith.constant 0 : index
    %c0_29 = arith.constant 0 : index
    %107 = vector.load %arg15[%c0_27, %c0_28, %c0_29] : memref<1x12x32xf32, #tpu.memory_space<vmem>>, vector<1x12x32xf32>
    %108 = vector.shape_cast %107 : vector<1x12x32xf32> to vector<12x32xf32>
    %c0_30 = arith.constant 0 : index
    %c0_31 = arith.constant 0 : index
    %109 = vector.load %arg6[%c0_30, %c0_31] : memref<32x32xf32, #tpu.memory_space<vmem>>, vector<32x32xf32>
    %cst_32 = arith.constant dense<0.000000e+00> : vector<12x32xf32>
    %110 = tpu.matmul %108, %109, %cst_32 {dimension_numbers = #tpu.dot_dimension_numbers<[1], [0], [0], [1], [0, 0, 1, 1], [], []>} : vector<12x32xf32>, vector<32x32xf32>, vector<12x32xf32> -> vector<12x32xf32>
    %c0_33 = arith.constant 0 : index
    %c0_34 = arith.constant 0 : index
    %111 = vector.load %arg7[%c0_33, %c0_34] : memref<1x32xf32, #tpu.memory_space<vmem>>, vector<1x32xf32>
    %112 = vector.broadcast %111 : vector<1x32xf32> to vector<12x32xf32>
    %113 = arith.addf %110, %112 : vector<12x32xf32>
    %114 = arith.addf %1, %113 : vector<12x32xf32>
    %c0_35 = arith.constant 0 : index
    %c0_36 = arith.constant 0 : index
    %115 = vector.load %arg8[%c0_35, %c0_36] : memref<1x32xf32, #tpu.memory_space<vmem>>, vector<1x32xf32>
    %c0_37 = arith.constant 0 : index
    %c0_38 = arith.constant 0 : index
    %116 = vector.load %arg9[%c0_37, %c0_38] : memref<1x32xf32, #tpu.memory_space<vmem>>, vector<1x32xf32>
    %cst_39 = arith.constant dense<0.000000e+00> : vector<12xf32>
    %117 = vector.multi_reduction <add>, %114, %cst_39 [1] : vector<12x32xf32> to vector<12xf32>
    %118 = vector.shape_cast %117 : vector<12xf32> to vector<12x1xf32>
    %cst_40 = arith.constant 3.200000e+01 : f32
    %119 = vector.broadcast %cst_40 : f32 to vector<12x1xf32>
    %120 = arith.divf %118, %119 : vector<12x1xf32>
    %121 = vector.broadcast %120 : vector<12x1xf32> to vector<12x32xf32>
    %122 = arith.subf %114, %121 : vector<12x32xf32>
    %123 = arith.mulf %122, %122 : vector<12x32xf32>
    %cst_41 = arith.constant dense<0.000000e+00> : vector<12xf32>
    %124 = vector.multi_reduction <add>, %123, %cst_41 [1] : vector<12x32xf32> to vector<12xf32>
    %125 = vector.shape_cast %124 : vector<12xf32> to vector<12x1xf32>
    %cst_42 = arith.constant 3.200000e+01 : f32
    %126 = vector.broadcast %cst_42 : f32 to vector<12x1xf32>
    %127 = arith.divf %125, %126 : vector<12x1xf32>
    %128 = vector.broadcast %120 : vector<12x1xf32> to vector<12x32xf32>
    %129 = arith.subf %114, %128 : vector<12x32xf32>
    %cst_43 = arith.constant 9.99999974E-6 : f32
    %130 = vector.broadcast %cst_43 : f32 to vector<12x1xf32>
    %131 = arith.addf %127, %130 : vector<12x1xf32>
    %132 = math.rsqrt %131 : vector<12x1xf32>
    %133 = vector.broadcast %132 : vector<12x1xf32> to vector<12x32xf32>
    %134 = arith.mulf %129, %133 : vector<12x32xf32>
    %135 = vector.broadcast %115 : vector<1x32xf32> to vector<12x32xf32>
    %136 = arith.mulf %134, %135 : vector<12x32xf32>
    %137 = vector.broadcast %116 : vector<1x32xf32> to vector<12x32xf32>
    %138 = arith.addf %136, %137 : vector<12x32xf32>
    %c0_44 = arith.constant 0 : index
    %c0_45 = arith.constant 0 : index
    %139 = vector.load %arg10[%c0_44, %c0_45] : memref<32x64xf32, #tpu.memory_space<vmem>>, vector<32x64xf32>
    %cst_46 = arith.constant dense<0.000000e+00> : vector<12x64xf32>
    %140 = tpu.matmul %138, %139, %cst_46 {dimension_numbers = #tpu.dot_dimension_numbers<[1], [0], [0], [1], [0, 0, 1, 1], [], []>} : vector<12x32xf32>, vector<32x64xf32>, vector<12x64xf32> -> vector<12x64xf32>
    %c0_47 = arith.constant 0 : index
    %c0_48 = arith.constant 0 : index
    %141 = vector.load %arg11[%c0_47, %c0_48] : memref<1x64xf32, #tpu.memory_space<vmem>>, vector<1x64xf32>
    %142 = vector.broadcast %141 : vector<1x64xf32> to vector<12x64xf32>
    %143 = arith.addf %140, %142 : vector<12x64xf32>
    %cst_49 = arith.constant 5.000000e-01 : f32
    %144 = vector.broadcast %cst_49 : f32 to vector<12x64xf32>
    %145 = arith.mulf %144, %143 : vector<12x64xf32>
    %cst_50 = arith.constant 0.707106769 : f32
    %146 = vector.broadcast %cst_50 : f32 to vector<12x64xf32>
    %147 = arith.mulf %143, %146 : vector<12x64xf32>
    %148 = math.erf %147 : vector<12x64xf32>
    %cst_51 = arith.constant 1.000000e+00 : f32
    %149 = vector.broadcast %cst_51 : f32 to vector<12x64xf32>
    %150 = arith.addf %149, %148 : vector<12x64xf32>
    %151 = arith.mulf %145, %150 : vector<12x64xf32>
    %c0_52 = arith.constant 0 : index
    %c0_53 = arith.constant 0 : index
    %152 = vector.load %arg12[%c0_52, %c0_53] : memref<64x32xf32, #tpu.memory_space<vmem>>, vector<64x32xf32>
    %cst_54 = arith.constant dense<0.000000e+00> : vector<12x32xf32>
    %153 = tpu.matmul %151, %152, %cst_54 {dimension_numbers = #tpu.dot_dimension_numbers<[1], [0], [0], [1], [0, 0, 1, 1], [], []>} : vector<12x64xf32>, vector<64x32xf32>, vector<12x32xf32> -> vector<12x32xf32>
    %c0_55 = arith.constant 0 : index
    %c0_56 = arith.constant 0 : index
    %154 = vector.load %arg13[%c0_55, %c0_56] : memref<1x32xf32, #tpu.memory_space<vmem>>, vector<1x32xf32>
    %155 = vector.broadcast %154 : vector<1x32xf32> to vector<12x32xf32>
    %156 = arith.addf %153, %155 : vector<12x32xf32>
    %157 = arith.addf %114, %156 : vector<12x32xf32>
    %158 = vector.shape_cast %157 : vector<12x32xf32> to vector<1x12x32xf32>
    %c0_57 = arith.constant 0 : index
    %c0_58 = arith.constant 0 : index
    %c0_59 = arith.constant 0 : index
    %159 = vector.load %arg14[%c0_57, %c0_58, %c0_59] : memref<1x12x32xf32, #tpu.memory_space<vmem>>, vector<1x12x32xf32>
    tpu.vector_store %arg14[%c0_57, %c0_58, %c0_59], %158 {strides = array<i32>} : memref<1x12x32xf32, #tpu.memory_space<vmem>>, vector<1x12x32xf32>,
    return
  }
  func.func @transform_0(%arg0: i32) -> (i32, i32, i32) {
    %c0_i32 = arith.constant 0 : i32
    %c0_i32_0 = arith.constant 0 : i32
    %c0_i32_1 = arith.constant 0 : i32
    return %arg0, %c0_i32, %c0_i32_0 : i32, i32, i32
  }
  func.func @transform_1(%arg0: i32) -> (i32, i32, i32) {
    %c0_i32 = arith.constant 0 : i32
    %c0_i32_0 = arith.constant 0 : i32
    %c0_i32_1 = arith.constant 0 : i32
    %c0_i32_2 = arith.constant 0 : i32
    return %c0_i32, %c0_i32_0, %c0_i32_1 : i32, i32, i32
  }
  func.func @transform_2(%arg0: i32) -> (i32, i32) {
    %c0_i32 = arith.constant 0 : i32
    %c0_i32_0 = arith.constant 0 : i32
    %c0_i32_1 = arith.constant 0 : i32
    return %c0_i32, %c0_i32_0 : i32, i32
  }
  func.func @transform_3(%arg0: i32) -> (i32, i32) {
    %c0_i32 = arith.constant 0 : i32
    %c0_i32_0 = arith.constant 0 : i32
    %c0_i32_1 = arith.constant 0 : i32
    return %c0_i32, %c0_i32_0 : i32, i32
  }
  func.func @transform_4(%arg0: i32) -> (i32, i32) {
    %c0_i32 = arith.constant 0 : i32
    %c0_i32_0 = arith.constant 0 : i32
    %c0_i32_1 = arith.constant 0 : i32
    return %c0_i32, %c0_i32_0 : i32, i32
  }
  func.func @transform_5(%arg0: i32) -> (i32, i32) {
    %c0_i32 = arith.constant 0 : i32
    %c0_i32_0 = arith.constant 0 : i32
    %c0_i32_1 = arith.constant 0 : i32
    return %c0_i32, %c0_i32_0 : i32, i32
  }
  func.func @transform_6(%arg0: i32) -> (i32, i32) {
    %c0_i32 = arith.constant 0 : i32
    %c0_i32_0 = arith.constant 0 : i32
    %c0_i32_1 = arith.constant 0 : i32
    return %c0_i32, %c0_i32_0 : i32, i32
  }
  func.func @transform_7(%arg0: i32) -> (i32, i32) {
    %c0_i32 = arith.constant 0 : i32
    %c0_i32_0 = arith.constant 0 : i32
    %c0_i32_1 = arith.constant 0 : i32
    return %c0_i32, %c0_i32_0 : i32, i32
  }
  func.func @transform_8(%arg0: i32) -> (i32, i32) {
    %c0_i32 = arith.constant 0 : i32
    %c0_i32_0 = arith.constant 0 : i32
    %c0_i32_1 = arith.constant 0 : i32
    return %c0_i32, %c0_i32_0 : i32, i32
  }
  func.func @transform_9(%arg0: i32) -> (i32, i32) {
    %c0_i32 = arith.constant 0 : i32
    %c0_i32_0 = arith.constant 0 : i32
    %c0_i32_1 = arith.constant 0 : i32
    return %c0_i32, %c0_i32_0 : i32, i32
  }
  func.func @transform_10(%arg0: i32) -> (i32, i32) {
    %c0_i32 = arith.constant 0 : i32
    %c0_i32_0 = arith.constant 0 : i32
    %c0_i32_1 = arith.constant 0 : i32
    return %c0_i32, %c0_i32_0 : i32, i32
  }
  func.func @transform_11(%arg0: i32) -> (i32, i32) {
    %c0_i32 = arith.constant 0 : i32
    %c0_i32_0 = arith.constant 0 : i32
    %c0_i32_1 = arith.constant 0 : i32
    return %c0_i32, %c0_i32_0 : i32, i32
  }
  func.func @transform_12(%arg0: i32) -> (i32, i32) {
    %c0_i32 = arith.constant 0 : i32
    %c0_i32_0 = arith.constant 0 : i32
    %c0_i32_1 = arith.constant 0 : i32
    return %c0_i32, %c0_i32_0 : i32, i32
  }
  func.func @transform_13(%arg0: i32) -> (i32, i32, i32) {
    %c0_i32 = arith.constant 0 : i32
    %c0_i32_0 = arith.constant 0 : i32
    %c0_i32_1 = arith.constant 0 : i32
    return %arg0, %c0_i32, %c0_i32_0 : i32, i32, i32
  }
}

</mosaic_0001>

<bundles_post_ra>
// kernel: tpu_custom_call.1
= control target key start
LH: loop header
LB: loop body
LE: loop exit
PB: predicated region body
PF: predicated region fallthrough
CT: control target
= control target key end

     0   :  { %s2349_s24 = smov 0   ;;  %s2604_s0 = inlined_call_operand.vmem [shape: f32[2,12,32], index: 0, kind: input, shape index: {}]   ;;  %s2605_s1 = inlined_call_operand.vmem [shape: f32[1,12,32], index: 1, kind: input, shape index: {}]   ;;  %s2606_s2 = inlined_call_operand.vmem [shape: f32[1,32], index: 2, kind: input, shape index: {}]   ;;  %s2607_s3 = inlined_call_operand.vmem [shape: f32[1,32], index: 3, kind: input, shape index: {}]   ;;  %s2608_s4 = inlined_call_operand.vmem [shape: f32[32,96], index: 4, kind: input, shape index: {}]   ;;  %s2609_s5 = inlined_call_operand.vmem [shape: f32[32,32], index: 5, kind: input, shape index: {}]   ;;  %s2610_s6 = inlined_call_operand.vmem [shape: f32[1,32], index: 6, kind: input, shape index: {}]   ;;  %s2611_s7 = inlined_call_operand.vmem [shape: f32[1,32], index: 7, kind: input, shape index: {}]   ;;  %s2612_s8 = inlined_call_operand.vmem [shape: f32[1,32], index: 8, kind: input, shape index: {}]   ;;  %s2613_s9 = inlined_call_operand.vmem [shape: f32[32,64], index: 9, kind: input, shape index: {}]   ;;  %s2614_s10 = inlined_call_operand.vmem [shape: f32[1,64], index: 10, kind: input, shape index: {}]   ;;  %s2615_s11 = inlined_call_operand.vmem [shape: f32[64,32], index: 11, kind: input, shape index: {}]   ;;  %s2616_s12 = inlined_call_operand.vmem [shape: f32[1,32], index: 12, kind: input, shape index: {}]   ;;  %s2617_s13 = inlined_call_operand.vmem [shape: f32[2,12,32], index: 13, kind: output, shape index: {}]  }
   0x1 LB: > { %s1834_s25 = sadd.s32 4294967295, %s2268_s24   ;;  %p1838_p0 = scmp.ge.s32.totalorder %s2268_s24, 1  ;;  %s2268_s24 = sphi %s2349_s24, %s23_s24  }
   0x2   : > { %p387_p1 = scmp.lt.s32.totalorder %s2268_s24, 3 }
   0x4   : > { %p388_p2 = pnand %p1838_p0, %p387_p1 }
   0x5   : > { %p431_p3 = scmp.lt.s32.totalorder (!%p388_p2), %s1834_s25, 1  ;;  %vm445_vm0 = vcmask (!%p388_p2), 261120   ;;  %vm449_vm1 = vcmask (!%p388_p2), 257024   ;;  %v490_v14 = vld [vmem:[%s2608_s4] sm:$0xff] (!%p388_p2)  ;;  %v491_v15 = vld [vmem:[%s2608_s4 + $0x8] sm:$0xff] (!%p388_p2)  ;;  %v492_v16 = vld [vmem:[%s2608_s4 + $0x10] sm:$0xff] (!%p388_p2) }
   0x6   : > { %391 = sbr.rel (%p388_p2) target bundleno = 2701 (0xa8d), region = 72  ;;  %v2058_v17 = vpack.c.bf16 (!%p388_p2), %v491_v15, %v490_v14  ;;  %v493_v18 = vld [vmem:[%s2608_s4 + $0x18] sm:$0xff] (!%p388_p2)  ;;  %v1843_v27 = vld [vmem:[%s2606_s2] ss:$0 sm:$0xff] (!%p388_p2)  ;;  %vm609_vm2 = vcmask (!%p388_p2), 64512   ;;  %s2270_s27 = smov (!%p388_p2), 112  }
   0x7   : > { %v2062_v19 = vpack.c.bf16 (!%p388_p2), %v493_v18, %v492_v16  ;;  %v1844_v29 = vld [vmem:[%s2607_s3] ss:$0 sm:$0xff] (!%p388_p2)  ;;  %s2271_s28 = smov (!%p388_p2), 120   ;;  %s2273_s30 = smov (!%p388_p2), 96   ;;  %vm2415_vm3 = vmpackc.low (!%p388_p2), %vm609_vm2, %vm609_vm2  ;;  %vm958_vm4 = vcmask (!%p388_p2), 93184   ;;  %vm954_vm5 = vcmask (!%p388_p2), 97280  }
   0x8   : > { %2059 = vmatprep.subr.bf16.mxu1 (!%p388_p2), %v2058_v17  ;;  %s2274_s1 = smov (!%p388_p2), 64   ;;  %vm1055_vm6 = vcmask (!%p388_p2), 1043456   ;;  %vm2275_vm7 = vmmov (!%p388_p2), 1   ;;  %vm1398_vm9 = vcmask (!%p388_p2), 60416   ;;  %s2276_s14 = smov (!%p388_p2), 8   ;;  %vm1410_vm10 = vcmask (!%p388_p2), 126016  }
   0x9   : > { %2061 = vmatpush3.bf16.msra.mxu1 (!%p388_p2), %v2058_v17  ;;  %vm2462_vm8 = vmpackc.low (!%p388_p2), %vm1055_vm6, %vm2275_vm7  ;;  %s2277_s15 = smov (!%p388_p2), 16   ;;  %vm1408_vm11 = vcmask (!%p388_p2), 130112   ;;  %vm1422_vm12 = vcmask (!%p388_p2), 191616   ;;  %vm1420_vm13 = vcmask (!%p388_p2), 195712   ;;  %vm1434_vm14 = vcmask (!%p388_p2), 257216  }
   0xa   : > { %2063 = vmatprep.subr.bf16.mxu1 (!%p388_p2), %v2062_v19  ;;  %vm1432_vm15 = vcmask (!%p388_p2), 261312  }
   0xd   : > { %s2623_s25 = smov (!%p431_p3, %s1834_s25), 1  ;;  %2065 = vmatpush3.bf16.msra.mxu1 %v2062_v19 }
   0xe   : > { %s1888_s26 = sshll.u32 %s2623_s25, 4 }
   0xf   : > { %s435_s29 = scalar_lea.vmem %s2604_s0, %s1888_s26  ;;  %s440_s16 = scalar_lea.vmem %s2617_s13, %s1888_s26 }
  0x10   : > { %v2365_v0 = vld [vmem:[%s435_s29] sm:$0xff]  ;;  %v2367_v1 = vld [vmem:[%s435_s29 + $0x8] sm:$0xf]  ;;  %s2272_s29 = smov 104  }
  0x11   : > { %v446_v2 = vsel %vm445_vm0, %v2365_v0, 0.0  ;;  %v450_v3 = vsel %vm449_vm1, %v2367_v1, 0.0 }
  0x12   : > { %447 = vadd.xlane.f32.xlu0 %v446_v2 }
  0x16   : > { %451 = vadd.xlane.f32.xlu0 %v450_v3 }
  0x9f   : > { %v448_v4 = vpop.xlane.xlu0 %447 }
  0xa0   : > { %v454_v5 = vmul.f32 0.03125, %v448_v4 }
  0xa2   : > { %v456_v6 = vsub.f32 %v2365_v0, %v454_v5 }
  0xa3   : > { %v452_v7 = vpop.xlane.xlu0 %451 }
  0xa4   : > { %v455_v8 = vmul.f32 0.03125, %v452_v7  ;;  %v458_v9 = vmul.f32 %v456_v6, %v456_v6 }
  0xa6   : > { %v457_v10 = vsub.f32 %v2367_v1, %v455_v8  ;;  %v460_v11 = vsel %vm445_vm0, %v458_v9, 0.0 }
  0xa7   : > { %461 = vadd.xlane.f32.xlu1 %v460_v11 }
  0xa8   : > { %v459_v12 = vmul.f32 %v457_v10, %v457_v10 }
  0xaa   : > { %v463_v13 = vsel %vm449_vm1, %v459_v12, 0.0 }
  0xab   : > { %464 = vadd.xlane.f32.xlu1 %v463_v13 }
 0x134   : > { %v462_v20 = vpop.xlane.xlu1 %461 }
 0x135   : > { %v466_v21 = vmul.f32 0.03125, %v462_v20 }
 0x137   : > { %v468_v22 = vadd.f32 1e-05, %v466_v21 }
 0x138   : > { %v465_v23 = vpop.xlane.xlu1 %464 }
 0x139   : > { %2218 = vrsqrt.f32 %v468_v22  ;;  %v467_v24 = vmul.f32 0.03125, %v465_v23 }
 0x13b   : > { %v469_v25 = vadd.f32 1e-05, %v467_v24 }
 0x13d   : > { %2220 = vrsqrt.f32 %v469_v25 }
 0x143   : > { %v2219_v26 = vpop.eup %2218 }
 0x144   : > { %v472_v28 = vmul.f32 %v2219_v26, %v456_v6 }
 0x146   : > { %v480_v30 = vmul.f32 %v1843_v27, %v472_v28 }
 0x147   : > { %v2221_v31 = vpop.eup %2220 }
 0x148   : > { %v473_v32 = vmul.f32 %v2221_v31, %v457_v10  ;;  %v488_v33 = vadd.f32 %v1844_v29, %v480_v30 }
 0x14a   : > { %v481_v34 = vmul.f32 %v1843_v27, %v473_v32  ;;  %1958 = vmatprep.mubr.msk.f32.mxu1 %vm445_vm0, %v488_v33 }
 0x14c   : > { %v489_v35 = vadd.f32 %v1844_v29, %v481_v34 }
 0x14e   : > { %1959 = vmatmul.mubr.msk.f32.vlgmr.msra.gmra.mrb[0].mxu1 %vm445_vm0, %v489_v35 }
 0x221   : > { %v1960_v36 = vpop.f32.mrb[0].mxu1 }
 0x222   : > { %v566_v37 = vpop.f32.mrb[1].mxu1  ;;  %v576_v48 = vmul.f32 0.17677669, %v1960_v36 }
 0x223   : > { %v2397_v38 = vpack.i.bf16 %v1960_v36, %v566_v37  ;;  %v575_v39 = vmul.f32 0.17677669, %v566_v37 }
 0x225   : > { %2169 = vrot.lane.b32.xlu1 %v2397_v38, %s2270_s27  ;;  %2164 = vrot.lane.b32.xlu0 %v2397_v38, %s2271_s28 }
 0x226   : > { %1965 = vmatprep.mubr.msk.f32.mxu1 %vm609_vm2, %v575_v39 }
 0x229   : > { %2174 = vrot.lane.b32.xlu1 %v2397_v38, %s2272_s29 }
 0x22d   : > { %2179 = vrot.lane.b32.xlu1 %v2397_v38, %s2273_s30 }
 0x297   : > { %v2404_v40 = vpop.permute.xlu1 %2169  ;;  %v2406_v41 = vpop.permute.xlu0 %2164 }
 0x298   : > { %2189 = vrot.lane.b32.xlu1 %v2404_v40, %s2273_s30  ;;  %2184 = vrot.lane.b32.xlu0 %v2406_v41, %s2273_s30 }
 0x29b   : > { %v2408_v42 = vpop.permute.xlu1 %2174 }
 0x29c   : > { %2194 = vrot.lane.b32.xlu0 %v2408_v42, %s2273_s30  ;;  %579 = vrot.lane.b32.xlu1 %v575_v39, %s2271_s28 }
 0x29f   : > { %v2180_v43 = vpop.permute.xlu1 %2179 }
 0x2a0   : > { %v2182_v44 = vunpack.i.h.bf16 %v2180_v43  ;;  %v2181_v45 = vunpack.i.l.bf16 %v2180_v43  ;;  %581 = vrot.lane.b32.xlu0 %v576_v48, %s2271_s28  ;;  %583 = vrot.lane.b32.xlu1 %v575_v39, %s2270_s27 }
 0x2a2   : > { %v2066_v47 = vpack.c.bf16 %v2182_v44, %v2181_v45 }
 0x2a4   : > { %2068 = vmatprep.subr.msk.bf16.mxu1 %vm2415_vm3, %v2066_v47  ;;  %585 = vrot.lane.b32.xlu0 %v576_v48, %s2270_s27  ;;  %s2278_s27 = smov 24  }
 0x2a5   : > { %2071 = vmatpush3.bf16.xpose.msk.msra.mxu1 %vm2415_vm3, %v2066_v47  ;;  %587 = vrot.lane.b32.xlu1 %v575_v39, %s2272_s29 }
 0x2a8   : > { %589 = vrot.lane.b32.xlu0 %v576_v48, %s2272_s29 }
 0x2ac   : > { %1966 = vmatmul.mubr.msk.f32.vlgmr.msra.gmra.mrb[2].mxu1 %vm609_vm2, %v576_v48 }
 0x30a   : > { %v2190_v49 = vpop.permute.xlu1 %2189  ;;  %v2185_v50 = vpop.permute.xlu0 %2184 }
 0x30b   : > { %v2192_v51 = vunpack.i.h.bf16 %v2190_v49  ;;  %v2191_v52 = vunpack.i.l.bf16 %v2190_v49  ;;  %v2187_v53 = vunpack.i.h.bf16 %v2185_v50  ;;  %v2186_v54 = vunpack.i.l.bf16 %v2185_v50 }
 0x30d   : > { %v2078_v55 = vpack.c.bf16 %v2192_v51, %v2191_v52  ;;  %v2072_v56 = vpack.c.bf16 %v2187_v53, %v2186_v54 }
 0x30e   : > { %v2195_v57 = vpop.permute.xlu0 %2194  ;;  %v580_v58 = vpop.permute.xlu1 %579 }
 0x30f   : > { %v2197_v59 = vunpack.i.h.bf16 %v2195_v57  ;;  %v2196_v60 = vunpack.i.l.bf16 %v2195_v57  ;;  %2074 = vmatprep.subr.msk.bf16.mxu0 %vm2415_vm3, %v2072_v56  ;;  %1972 = vmatprep.mubr.msk.f32.mxu0 %vm609_vm2, %v580_v58 }
 0x310   : > { %2080 = vmatprep.subr.msk.bf16.mxu1 %vm2415_vm3, %v2078_v55  ;;  %2077 = vmatpush3.bf16.xpose.msk.msra.mxu0 %vm2415_vm3, %v2072_v56 }
 0x311   : > { %v2084_v61 = vpack.c.bf16 %v2197_v59, %v2196_v60  ;;  %2083 = vmatpush3.bf16.xpose.msk.msra.mxu1 %vm2415_vm3, %v2078_v55 }
 0x312   : > { %v582_v62 = vpop.permute.xlu0 %581  ;;  %v584_v63 = vpop.permute.xlu1 %583 }
 0x313   : > { %2086 = vmatprep.subr.msk.bf16.mxu0 %vm2415_vm3, %v2084_v61  ;;  %1979 = vmatprep.mubr.msk.f32.mxu1 %vm609_vm2, %v584_v63 }
 0x316   : > { %v586_v2 = vpop.permute.xlu0 %585 }
 0x317   : > { %v588_v3 = vpop.permute.xlu1 %587  ;;  %1973 = vmatmul.mubr.msk.f32.vlgmr.msra.gmra.mrb[0].mxu0 %vm609_vm2, %v582_v62 }
 0x318   : > { %1980 = vmatmul.mubr.msk.f32.vlgmr.msra.gmra.mrb[4].mxu1 %vm609_vm2, %v586_v2  ;;  %2089 = vmatpush3.bf16.xpose.msk.msra.mxu0 %vm2415_vm3, %v2084_v61 }
 0x319   : > { %1986 = vmatprep.mubr.msk.f32.mxu0 %vm609_vm2, %v588_v3 }
 0x31a   : > { %v590_v4 = vpop.permute.xlu0 %589 }
 0x31f   : > { %1987 = vmatmul.mubr.msk.f32.vlgmr.msra.gmra.mrb[2].mxu0 %vm609_vm2, %v590_v4 }
 0x37f   : > { %v1967_v5 = vpop.f32.mrb[2].mxu1 }
 0x380   : > { %v684_v6 = vpop.f32.mrb[3].mxu1  ;;  %v959_v7 = vsel %vm958_vm4, %v1967_v5, -inf }
 0x381   : > { %960 = vmax.xlane.f32.xlu0 %v959_v7  ;;  %v955_v8 = vsel %vm954_vm5, %v684_v6, -inf }
 0x382   : > { %956 = vmax.xlane.f32.xlu1 %v955_v8 }
 0x3ea   : > { %v1974_v9 = vpop.f32.mrb[0].mxu0 }
 0x3eb   : > { %v1981_v10 = vpop.f32.mrb[4].mxu1  ;;  %v771_v11 = vpop.f32.mrb[1].mxu0  ;;  %v965_v12 = vsel %vm958_vm4, %v1974_v9, -inf }
 0x3ec   : > { %v858_v13 = vpop.f32.mrb[5].mxu1  ;;  %966 = vmax.xlane.f32.xlu0 %v965_v12  ;;  %v962_v15 = vsel %vm954_vm5, %v771_v11, -inf  ;;  %v971_v18 = vsel %vm958_vm4, %v1981_v10, -inf }
 0x3ed   : > { %v968_v14 = vsel %vm954_vm5, %v858_v13, -inf }
 0x3ee   : > { %969 = vmax.xlane.f32.xlu1 %v968_v14 }
 0x3f0   : > { %963 = vmax.xlane.f32.xlu0 %v962_v15 }
 0x3f2   : > { %v1988_v16 = vpop.f32.mrb[2].mxu0 }
 0x3f3   : > { %v2447_v17 = vpop.f32.mrb[3].mxu0  ;;  %v977_v20 = vsel %vm958_vm4, %v1988_v16, -inf }
 0x3f4   : > { %972 = vmax.xlane.f32.xlu0 %v971_v18  ;;  %v974_v19 = vsel %vm954_vm5, %v2447_v17, -inf }
 0x3f5   : > { %975 = vmax.xlane.f32.xlu1 %v974_v19 }
 0x3f8   : > { %978 = vmax.xlane.f32.xlu0 %v977_v20 }
 0x406   : > { %2199 = vrot.lane.b32.xlu1 %v2397_v38, %s2274_s1 }
 0x40e   : > { %v961_v21 = vpop.xlane.xlu0 %960 }
 0x40f   : > { %v981_v22 = vsub.f32 %v1967_v5, %v961_v21  ;;  %v957_v24 = vpop.xlane.xlu1 %956 }
 0x410   : > { %v980_v25 = vsub.f32 %v684_v6, %v957_v24 }
 0x411   : > { %v990_v23 = vmul.f32 1.442695, %v981_v22 }
 0x412   : > { %v988_v26 = vmul.f32 1.442695, %v980_v25 }
 0x413   : > { %2222 = vpow2.f32 %v990_v23 }
 0x414   : > { %2224 = vpow2.f32 %v988_v26 }
 0x41d   : > { %v2455_v27 = vpop.eup %2222 }
 0x41e   : > { %v1007_v28 = vsel %vm958_vm4, %v2455_v27, 0.0  ;;  %v2225_v29 = vpop.eup %2224 }
 0x41f   : > { %1008 = vadd.xlane.f32.xlu0 %v1007_v28  ;;  %v1004_v30 = vsel %vm954_vm5, %v2225_v29, 0.0 }
 0x42a   : > { %1005 = vadd.xlane.f32.xlu1 %v1004_v30 }
 0x479   : > { %v967_v31 = vpop.xlane.xlu0 %966 }
 0x47a   : > { %v983_v32 = vsub.f32 %v1974_v9, %v967_v31 }
 0x47b   : > { %v970_v33 = vpop.xlane.xlu1 %969 }
 0x47c   : > { %v994_v34 = vmul.f32 1.442695, %v983_v32  ;;  %v984_v35 = vsub.f32 %v858_v13, %v970_v33 }
 0x47d   : > { %v964_v36 = vpop.xlane.xlu0 %963 }
 0x47e   : > { %2226 = vpow2.f32 %v994_v34  ;;  %v982_v37 = vsub.f32 %v771_v11, %v964_v36  ;;  %v996_v38 = vmul.f32 1.442695, %v984_v35 }
 0x480   : > { %v992_v39 = vmul.f32 1.442695, %v982_v37 }
 0x481   : > { %v973_v43 = vpop.xlane.xlu0 %972 }
 0x482   : > { %2228 = vpow2.f32 %v992_v39  ;;  %v985_v44 = vsub.f32 %v1981_v10, %v973_v43  ;;  %v976_v45 = vpop.xlane.xlu1 %975 }
 0x483   : > { %2230 = vpow2.f32 %v996_v38  ;;  %v986_v3 = vsub.f32 %v2447_v17, %v976_v45 }
 0x484   : > { %v998_v46 = vmul.f32 1.442695, %v985_v44 }
 0x485   : > { %v979_v47 = vpop.xlane.xlu0 %978  ;;  %v1000_v5 = vmul.f32 1.442695, %v986_v3  ;;  %v1875_v3 = vld [vmem:[%s2610_s6] ss:$0 sm:$0xff] }
 0x486   : > { %2232 = vpow2.f32 %v998_v46  ;;  %v987_v48 = vsub.f32 %v1988_v16, %v979_v47  ;;  %v2200_v49 = vpop.permute.xlu1 %2199 }
 0x487   : > { %v2202_v50 = vunpack.i.h.bf16 %v2200_v49  ;;  %v2201_v51 = vunpack.i.l.bf16 %v2200_v49  ;;  %v1438_v49 = vld [vmem:[%s2609_s5] sm:$0xff] }
 0x488   : > { %v2460_v52 = vpop.eup %2226  ;;  %v1002_v53 = vmul.f32 1.442695, %v987_v48 }
 0x489   : > { %v2090_v55 = vpack.c.bf16 %v2202_v50, %v2201_v51  ;;  %v1013_v56 = vsel %vm958_vm4, %v2460_v52, 0.0  ;;  %v1439_v50 = vld [vmem:[%s2609_s5 + $0x8] sm:$0xff] }
 0x48a   : > { %2234 = vpow2.f32 %v1002_v53  ;;  %1014 = vadd.xlane.f32.xlu0 %v1013_v56  ;;  %v2114_v51 = vpack.c.bf16 %v1439_v50, %v1438_v49  ;;  %v1441_v53 = vld [vmem:[%s2609_s5 + $0x18] sm:$0xff]  ;;  %v1683_v49 = vld [vmem:[%s2615_s11 + $0x28] sm:$0xff] }
 0x48b   : > { %2092 = vmatprep.subr.msk.bf16.mxu1 %vm2462_vm8, %v2090_v55 }
 0x48c   : > { %v2229_v57 = vpop.eup %2228  ;;  %2095 = vmatpush3.bf16.msk.msra.mxu1 %vm2462_vm8, %v2090_v55 }
 0x48d   : > { %v1010_v58 = vsel %vm954_vm5, %v2229_v57, 0.0  ;;  %v2231_v59 = vpop.eup %2230 }
 0x48e   : > { %1011 = vadd.xlane.f32.xlu1 %v1010_v58  ;;  %v1016_v62 = vsel %vm954_vm5, %v2231_v59, 0.0 }
 0x490   : > { %v2233_v60 = vpop.eup %2232 }
 0x491   : > { %v1019_v61 = vsel %vm958_vm4, %v2233_v60, 0.0 }
 0x492   : > { %1020 = vadd.xlane.f32.xlu0 %v1019_v61  ;;  %1017 = vadd.xlane.f32.xlu1 %v1016_v62 }
 0x494   : > { %v2475_v63 = vpop.eup %2234 }
 0x495   : > { %v1025_v2 = vsel %vm958_vm4, %v2475_v63, 0.0 }
 0x496   : > { %1026 = vadd.xlane.f32.xlu0 %v1025_v2 }
 0x4a3   : > { %2209 = vrot.lane.b32.xlu1 %v2404_v40, %s2274_s1 }
 0x4ac   : > { %2204 = vrot.lane.b32.xlu0 %v2406_v41, %s2274_s1  ;;  %v1009_v4 = vpop.xlane.xlu0 %1008 }
 0x4ad   : > { %2236 = vrcp.f32 %v1009_v4 }
 0x4b7   : > { %v1006_v6 = vpop.xlane.xlu1 %1005  ;;  %v2237_v7 = vpop.eup %2236 }
 0x4b8   : > { %2238 = vrcp.f32 %v1006_v6  ;;  %v1037_v11 = vmul.f32 %v2237_v7, %v2455_v27 }
 0x4b9   : > { %2240 = vpow2.f32 %v1000_v5 }
 0x4c2   : > { %v2239_v8 = vpop.eup %2238 }
 0x4c3   : > { %v2241_v9 = vpop.eup %2240  ;;  %v1036_v10 = vmul.f32 %v2239_v8, %v2225_v29 }
 0x4c4   : > { %v1022_v40 = vsel %vm954_vm5, %v2241_v9, 0.0 }
 0x4c5   : > { %1993 = vmatprep.mubr.msk.f32.mxu1 %vm954_vm5, %v1036_v10 }
 0x4c6   : > { %1994 = vmatmul.mubr.msk.f32.vlgmr.msra.gmra.mrb[6].mxu1 %vm954_vm5, %v1037_v11 }
 0x4c7   : > { %1023 = vadd.xlane.f32.xlu1 %v1022_v40 }
 0x4d8   : > { %2214 = vrot.lane.b32.xlu1 %v2408_v42, %s2274_s1 }
 0x517   : > { %v1015_v41 = vpop.xlane.xlu0 %1014 }
 0x51b   : > { %v1012_v12 = vpop.xlane.xlu1 %1011 }
 0x51c   : > { %2242 = vrcp.f32 %v1012_v12 }
 0x51d   : > { %2244 = vrcp.f32 %v1015_v41 }
 0x51f   : > { %v1021_v13 = vpop.xlane.xlu0 %1020  ;;  %v1018_v14 = vpop.xlane.xlu1 %1017 }
 0x520   : > { %2246 = vrcp.f32 %v1021_v13 }
 0x521   : > { %2248 = vrcp.f32 %v1018_v14 }
 0x523   : > { %v1027_v15 = vpop.xlane.xlu0 %1026  ;;  %v2210_v16 = vpop.permute.xlu1 %2209 }
 0x524   : > { %v2212_v17 = vunpack.i.h.bf16 %v2210_v16  ;;  %v2211_v18 = vunpack.i.l.bf16 %v2210_v16  ;;  %2250 = vrcp.f32 %v1027_v15 }
 0x526   : > { %v2243_v19 = vpop.eup %2242  ;;  %v2102_v20 = vpack.c.bf16 %v2212_v17, %v2211_v18  ;;  %v1576_v18 = vld [vmem:[%s2613_s9] sm:$0xff] }
 0x527   : > { %v2205_v21 = vpop.permute.xlu0 %2204  ;;  %v1038_v22 = vmul.f32 %v2243_v19, %v2229_v57  ;;  %v2245_v42 = vpop.eup %2244  ;;  %v1577_v19 = vld [vmem:[%s2613_s9 + $0x8] sm:$0xff] }
 0x528   : > { %v2207_v23 = vunpack.i.h.bf16 %v2205_v21  ;;  %v2206_v24 = vunpack.i.l.bf16 %v2205_v21  ;;  %2104 = vmatprep.subr.msk.bf16.mxu0 %vm2462_vm8, %v2102_v20  ;;  %v1039_v30 = vmul.f32 %v2245_v42, %v2460_v52  ;;  %v1440_v52 = vld [vmem:[%s2609_s5 + $0x10] sm:$0xff] }
 0x529   : > { %2000 = vmatprep.mubr.msk.f32.mxu1 %vm954_vm5, %v1038_v22  ;;  %2107 = vmatpush3.bf16.msk.msra.mxu0 %vm2462_vm8, %v2102_v20  ;;  %v2118_v54 = vpack.c.bf16 %v1441_v53, %v1440_v52  ;;  %v2122_v20 = vpack.c.bf16 %v1577_v19, %v1576_v18  ;;  %v1578_v21 = vld [vmem:[%s2613_s9 + $0x10] sm:$0xff]  ;;  %v1579_v22 = vld [vmem:[%s2613_s9 + $0x18] sm:$0xff] }
 0x52a   : > { %v2247_v25 = vpop.eup %2246  ;;  %v2096_v26 = vpack.c.bf16 %v2207_v23, %v2206_v24  ;;  %2115 = vmatprep.subr.bf16.mxu0 %v2114_v51  ;;  %v2126_v23 = vpack.c.bf16 %v1579_v22, %v1578_v21  ;;  %v1685_v52 = vld [vmem:[%s2615_s11 + $0x38] sm:$0xff] }
 0x52b   : > { %v2249_v27 = vpop.eup %2248  ;;  %v1041_v28 = vmul.f32 %v2247_v25, %v2233_v60 }
 0x52c   : > { %2098 = vmatprep.subr.msk.bf16.mxu1 %vm2462_vm8, %v2096_v26  ;;  %v1040_v29 = vmul.f32 %v2249_v27, %v2231_v59 }
 0x52d   : > { %2101 = vmatpush3.bf16.msk.msra.mxu1 %vm2462_vm8, %v2096_v26 }
 0x52e   : > { %2007 = vmatprep.mubr.msk.f32.mxu0 %vm954_vm5, %v1040_v29  ;;  %v2251_v36 = vpop.eup %2250 }
 0x52f   : > { %2008 = vmatmul.mubr.msk.f32.vlgmr.msra.gmra.mrb[4].mxu0 %vm954_vm5, %v1041_v28  ;;  %v1043_v39 = vmul.f32 %v2251_v36, %v2475_v63 }
 0x530   : > { %2001 = vmatmul.mubr.msk.f32.vlgmr.msra.gmra.mrb[8].mxu1 %vm954_vm5, %v1039_v30  ;;  %2117 = vmatpush3.bf16.msra.mxu0 %v2114_v51  ;;  %v1878_v30 = vld [vmem:[%s2611_s7] ss:$0 sm:$0xff]  ;;  %v1684_v51 = vld [vmem:[%s2615_s11 + $0x30] sm:$0xff] }
 0x531   : > { %2119 = vmatprep.subr.bf16.mxu0 %v2118_v54  ;;  %v2142_v53 = vpack.c.bf16 %v1685_v52, %v1684_v51 }
 0x534   : > { %2121 = vmatpush3.bf16.msra.mxu0 %v2118_v54  ;;  %v1880_v54 = vld [vmem:[%s2614_s10] ss:$0 sm:$0xff] }
 0x554   : > { %v1024_v31 = vpop.xlane.xlu1 %1023 }
 0x555   : > { %2252 = vrcp.f32 %v1024_v31 }
 0x558   : > { %v2215_v32 = vpop.permute.xlu1 %2214 }
 0x559   : > { %v2217_v33 = vunpack.i.h.bf16 %v2215_v32  ;;  %v2216_v34 = vunpack.i.l.bf16 %v2215_v32  ;;  %v1879_v32 = vld [vmem:[%s2612_s8] ss:$0 sm:$0xff] }
 0x55b   : > { %v2108_v35 = vpack.c.bf16 %v2217_v33, %v2216_v34 }
 0x55d   : > { %2110 = vmatprep.subr.msk.bf16.mxu1 %vm2462_vm8, %v2108_v35 }
 0x55e   : > { %2113 = vmatpush3.bf16.msk.msra.mxu1 %vm2462_vm8, %v2108_v35 }
 0x55f   : > { %v2253_v37 = vpop.eup %2252  ;;  %2123 = vmatprep.subr.bf16.mxu1 %v2122_v20 }
 0x560   : > { %v1042_v38 = vmul.f32 %v2253_v37, %v2241_v9 }
 0x562   : > { %2014 = vmatprep.mubr.msk.f32.mxu1 %vm954_vm5, %v1042_v38 }
 0x563   : > { %2015 = vmatmul.mubr.msk.f32.vlgmr.msra.gmra.mrb[10].mxu1 %vm954_vm5, %v1043_v39  ;;  %v1678_v39 = vld [vmem:[%s2615_s11] sm:$0xff] }
 0x564   : > { %2125 = vmatpush3.bf16.msra.mxu1 %v2122_v20 }
 0x565   : > { %2127 = vmatprep.subr.bf16.mxu1 %v2126_v23 }
 0x568   : > { %2129 = vmatpush3.bf16.msra.mxu1 %v2126_v23 }
 0x599   : > { %v1995_v43 = vpop.f32.mrb[6].mxu1 }
 0x59a   : > { %1399 = vst.msk [vmem:[#allocation2 + $0x8] sm:$0xf] %vm1398_vm9, %v1995_v43  ;;  %v1124_v44 = vpop.f32.mrb[7].mxu1  ;;  %v1679_v43 = vld [vmem:[%s2615_s11 + $0x8] sm:$0xff] }
 0x59b   : > { %1397 = vst.msk [vmem:[#allocation2] sm:$0xff] %vm609_vm2, %v1124_v44  ;;  %v2130_v44 = vpack.c.bf16 %v1679_v43, %v1678_v39  ;;  %vm1693_vm2 = vcmask 523264  }
 0x59d   : > { %2131 = vmatprep.subr.bf16.mxu0 %v2130_v44 }
 0x602   : > { %v2009_v45 = vpop.f32.mrb[4].mxu0 }
 0x603   : > { %v1300_v46 = vpop.f32.mrb[5].mxu0  ;;  %v2002_v47 = vpop.f32.mrb[8].mxu1 }
 0x604   : > { %1404 = vrot.lane.b32.xlu0 %v2002_v47, %s2276_s14  ;;  %v1212_v48 = vpop.f32.mrb[9].mxu1 }
 0x605   : > { %1402 = vrot.lane.b32.xlu1 %v1212_v48, %s2276_s14  ;;  %v1682_v48 = vld [vmem:[%s2615_s11 + $0x20] sm:$0xff] }
 0x606   : > { %v2138_v50 = vpack.c.bf16 %v1683_v49, %v1682_v48 }
 0x608   : > { %1416 = vrot.lane.b32.xlu0 %v2009_v45, %s2277_s15  ;;  %v1680_v45 = vld [vmem:[%s2615_s11 + $0x10] sm:$0xff] }
 0x609   : > { %1414 = vrot.lane.b32.xlu1 %v1300_v46, %s2277_s15  ;;  %v1681_v46 = vld [vmem:[%s2615_s11 + $0x18] sm:$0xff] }
 0x60a   : > { %v2134_v47 = vpack.c.bf16 %v1681_v46, %v1680_v45 }
 0x636   : > { %v2016_v55 = vpop.f32.mrb[10].mxu1 }
 0x637   : > { %1428 = vrot.lane.b32.xlu0 %v2016_v55, %s2278_s27  ;;  %v1388_v56 = vpop.f32.mrb[11].mxu1 }
 0x638   : > { %1426 = vrot.lane.b32.xlu1 %v1388_v56, %s2278_s27 }
 0x676   : > { %v1405_v57 = vpop.permute.xlu0 %1404 }
 0x677   : > { %1411 = vst.msk [vmem:[#allocation2 + $0x8] sm:$0xf] %vm1410_vm10, %v1405_v57  ;;  %v1403_v58 = vpop.permute.xlu1 %1402 }
 0x678   : > { %1409 = vst.msk [vmem:[#allocation2] sm:$0xff] %vm1408_vm11, %v1403_v58 }
 0x67a   : > { %v1417_v59 = vpop.permute.xlu0 %1416 }
 0x67b   : > { %1423 = vst.msk [vmem:[#allocation2 + $0x8] sm:$0xf] %vm1422_vm12, %v1417_v59  ;;  %v1415_v60 = vpop.permute.xlu1 %1414 }
 0x67c   : > { %1421 = vst.msk [vmem:[#allocation2] sm:$0xff] %vm1420_vm13, %v1415_v60 }
 0x6a9   : > { %v1429_v61 = vpop.permute.xlu0 %1428 }
 0x6aa   : > { %1435 = vst.msk [vmem:[#allocation2 + $0x8] sm:$0xf] %vm1434_vm14, %v1429_v61  ;;  %v1427_v62 = vpop.permute.xlu1 %1426 }
 0x6ab   : > { %1433 = vst.msk [vmem:[#allocation2] sm:$0xff] %vm1432_vm15, %v1427_v62 }
 0x6b1   : > { %v1437_v2 = vld [vmem:[#allocation2 + $0x8] sm:$0xf] }
 0x6b2   : > { %v1436_v63 = vld [vmem:[#allocation2] sm:$0xff] }
 0x6b3   : > { %2025 = vmatprep.mubr.msk.f32.mxu0 %vm445_vm0, %v1436_v63 }
 0x6b4   : > { %2026 = vmatmul.mubr.msk.f32.vlgmr.msra.gmra.mrb[6].mxu0 %vm445_vm0, %v1437_v2 }
 0x6b5   : > { %2133 = vmatpush3.bf16.msra.mxu0 %v2130_v44 }
 0x6b6   : > { %2135 = vmatprep.subr.bf16.mxu0 %v2134_v47 }
 0x6b9   : > { %2137 = vmatpush3.bf16.msra.mxu0 %v2134_v47 }
 0x6ba   : > { %2139 = vmatprep.subr.bf16.mxu0 %v2138_v50 }
 0x6bd   : > { %2141 = vmatpush3.bf16.msra.mxu0 %v2138_v50 }
 0x6be   : > { %2143 = vmatprep.subr.bf16.mxu0 %v2142_v53 }
 0x6c1   : > { %2145 = vmatpush3.bf16.msra.mxu0 %v2142_v53 }
 0x787   : > { %v2027_v4 = vpop.f32.mrb[6].mxu0 }
 0x788   : > { %v1527_v5 = vadd.f32 %v2027_v4, %v1875_v3  ;;  %v1521_v6 = vpop.f32.mrb[7].mxu0 }
 0x789   : > { %v1522_v7 = vadd.f32 %v1875_v3, %v1521_v6 }
 0x78a   : > { %v2529_v8 = vadd.f32 %v1527_v5, %v2367_v1 }
 0x78b   : > { %v2532_v9 = vadd.f32 %v1522_v7, %v2365_v0  ;;  %v1883_v7 = vld [vmem:[%s2616_s12] ss:$0 sm:$0xff] }
 0x78c   : > { %v1537_v10 = vsel %vm449_vm1, %v2529_v8, 0.0 }
 0x78d   : > { %1538 = vadd.xlane.f32.xlu0 %v1537_v10  ;;  %v1534_v11 = vsel %vm445_vm0, %v2532_v9, 0.0 }
 0x78e   : > { %1535 = vadd.xlane.f32.xlu1 %v1534_v11 }
 0x81a   : > { %v1539_v40 = vpop.xlane.xlu0 %1538 }
 0x81b   : > { %v1541_v41 = vmul.f32 0.03125, %v1539_v40  ;;  %v1536_v12 = vpop.xlane.xlu1 %1535 }
 0x81c   : > { %v1540_v13 = vmul.f32 0.03125, %v1536_v12 }
 0x81d   : > { %v1543_v14 = vsub.f32 %v2529_v8, %v1541_v41 }
 0x81e   : > { %v1542_v1 = vsub.f32 %v2532_v9, %v1540_v13 }
 0x81f   : > { %v1545_v16 = vmul.f32 %v1543_v14, %v1543_v14 }
 0x820   : > { %v1544_v15 = vmul.f32 %v1542_v1, %v1542_v1 }
 0x821   : > { %v1549_v17 = vsel %vm449_vm1, %v1545_v16, 0.0 }
 0x822   : > { %v1546_v0 = vsel %vm445_vm0, %v1544_v15, 0.0 }
 0x823   : > { %1547 = vadd.xlane.f32.xlu0 %v1546_v0 }
 0x827   : > { %1550 = vadd.xlane.f32.xlu0 %v1549_v17 }
 0x8b0   : > { %v1548_v24 = vpop.xlane.xlu0 %1547 }
 0x8b1   : > { %v1552_v42 = vmul.f32 0.03125, %v1548_v24 }
 0x8b3   : > { %v1554_v25 = vadd.f32 1e-05, %v1552_v42 }
 0x8b4   : > { %v1551_v26 = vpop.xlane.xlu0 %1550 }
 0x8b5   : > { %2254 = vrsqrt.f32 %v1554_v25  ;;  %v1553_v27 = vmul.f32 0.03125, %v1551_v26 }
 0x8b7   : > { %v1555_v28 = vadd.f32 1e-05, %v1553_v27 }
 0x8b9   : > { %2256 = vrsqrt.f32 %v1555_v28 }
 0x8bf   : > { %v2255_v29 = vpop.eup %2254 }
 0x8c0   : > { %v1558_v31 = vmul.f32 %v2255_v29, %v1542_v1 }
 0x8c2   : > { %v1566_v33 = vmul.f32 %v1878_v30, %v1558_v31 }
 0x8c3   : > { %v2257_v34 = vpop.eup %2256 }
 0x8c4   : > { %v1559_v35 = vmul.f32 %v2257_v34, %v1543_v14  ;;  %v1574_v36 = vadd.f32 %v1879_v32, %v1566_v33 }
 0x8c6   : > { %v1567_v37 = vmul.f32 %v1878_v30, %v1559_v35  ;;  %2036 = vmatprep.mubr.msk.f32.mxu1 %vm445_vm0, %v1574_v36 }
 0x8c8   : > { %v1575_v38 = vadd.f32 %v1879_v32, %v1567_v37 }
 0x8ca   : > { %2037 = vmatmul.mubr.msk.f32.vlgmr.msra.gmra.mrb[12].mxu1 %vm445_vm0, %v1575_v38 }
 0x99d   : > { %v2038_v55 = vpop.f32.mrb[12].mxu1 }
 0x99e   : > { %v1665_v56 = vadd.f32 %v2038_v55, %v1880_v54  ;;  %v1659_v57 = vpop.f32.mrb[13].mxu1 }
 0x99f   : > { %v1660_v58 = vadd.f32 %v1880_v54, %v1659_v57 }
 0x9a0   : > { %v1671_v59 = vmul.f32 0.70710677, %v1665_v56  ;;  %v1669_v4 = vmul.f32 0.5, %v1665_v56 }
 0x9a1   : > { %v1670_v60 = vmul.f32 0.70710677, %v1660_v58  ;;  %v1668_v2 = vmul.f32 0.5, %v1660_v58 }
 0x9a2   : > { %2258 = verf.f32 %v1671_v59 }
 0x9a3   : > { %2260 = verf.f32 %v1670_v60 }
 0x9ac   : > { %v2259_v61 = vpop.eup %2258 }
 0x9ad   : > { %v2261_v62 = vpop.eup %2260  ;;  %v1675_v63 = vadd.f32 1.0, %v2259_v61 }
 0x9ae   : > { %v1674_v3 = vadd.f32 1.0, %v2261_v62 }
 0x9af   : > { %v1677_v6 = vmul.f32 %v1675_v63, %v1669_v4 }
 0x9b0   : > { %v1676_v5 = vmul.f32 %v1674_v3, %v1668_v2 }
 0x9b2   : > { %2055 = vmatprep.mubr.msk.f32.mxu0 %vm1693_vm2, %v1676_v5 }
 0x9b3   : > { %2056 = vmatmul.mubr.msk.f32.vlgmr.msra.gmra.mrb[8].mxu0 %vm1693_vm2, %v1677_v6 }
 0xa86   : > { %v2057_v10 = vpop.f32.mrb[8].mxu0 }
 0xa87   : > { %v1772_v11 = vadd.f32 %v2057_v10, %v1883_v7  ;;  %v1766_v40 = vpop.f32.mrb[9].mxu0 }
 0xa88   : > { %v1767_v41 = vadd.f32 %v1883_v7, %v1766_v40 }
 0xa89   : > { %v1776_v12 = vadd.f32 %v1772_v11, %v2529_v8 }
 0xa8a   : > { %v1775_v13 = vadd.f32 %v1767_v41, %v2532_v9 }
 0xa8b   : > { %1778 = vst.msk [vmem:[%s440_s16 + $0x8] sm:$0xf] %vm449_vm1, %v1776_v12 }
 0xa8c   : > { %1777 = vst.msk [vmem:[%s440_s16] sm:$0xff] %vm445_vm0, %v1775_v13 }
 0xa8d PF: > { %s23_s24 = sadd.s32 1, %s2268_s24  }
 0xa8e   : > { %p20_p4 = scmp.ge.s32.totalorder %s23_s24, 4  }
 0xa90   :  { %22 = sbr.rel (!%p20_p4) target bundleno = 1 (0x1), region = 102 }

</bundles_post_ra>
